<compile_context>
chip_gen: v7x
topology: tpu7x:2x2x1
jax: 0.10.0
libtpu: 0.0.40
codegen_flags: <defaults>
</compile_context>

<pallas_src>
import functools

import jax
import jax.numpy as jnp
from jax.experimental import pallas as pl
from jax.experimental.pallas import tpu as pltpu


def _round_up(x, m):
    return ((x + m - 1) // m) * m


# ----------------------------------------------------------------------------
# Pallas kernel
# ----------------------------------------------------------------------------
def critic_kernel(c1h_ref, sa_ref, wenc_ref, w1_ref, b1_ref, w2_ref, b2_ref,
                  wh_ref, bh_ref, q_ref, *, n_experts, h2_dim):
    f32 = jnp.float32
    bf16 = jnp.bfloat16

    # Mixture weights for every expert, pre-broadcast over that expert's H2
    # lanes: (TB, Cp) @ (Cp, E*H2) -- one tiny MXU matmul, no lane broadcasts.
    wmix_wide = jnp.dot(c1h_ref[...], wenc_ref[...],
                        preferred_element_type=f32)          # (TB, E*H2)

    # Layer 1, all experts fused: (TB, Din) @ (Din, E*H1)
    h1 = jnp.dot(sa_ref[...], w1_ref[...],
                 preferred_element_type=f32) + b1_ref[...]
    h1 = jnp.maximum(h1, 0.0)                                 # backbone ReLU

    # Layer 2, block-diagonal over experts: (TB, E*H1) @ (E*H1, E*H2)
    h2 = jnp.dot(h1.astype(bf16), w2_ref[...],
                 preferred_element_type=f32) + b2_ref[...]
    # backbone last ReLU; agg_activation[0]='relu' is identical (idempotent)
    h2 = jnp.maximum(h2, 0.0)

    # Mixture aggregation: one dense VPU multiply, then reduce over experts
    # with a lane-roll tree (XLU).  The expert sum lands in lanes [0:H2]; the
    # junk in remaining lanes is killed by zero rows of the padded head weight.
    weighted = h2 * wmix_wide                                 # (TB, E*H2) f32
    E = n_experts
    acc = weighted
    if (E & (E - 1)) == 0:                                    # power of two
        shift = (E // 2) * h2_dim
        while shift >= h2_dim:
            acc = acc + pltpu.roll(acc, shift=shift, axis=1)
            shift //= 2
    else:                                                     # general E
        for e in range(1, E):
            acc = acc + pltpu.roll(weighted, shift=e * h2_dim, axis=1)
    mixed = jnp.maximum(acc, 0.0)                             # agg_activation[1]

    # All context heads in one lane-dense matmul: (TB, E*H2) @ (E*H2, >=128).
    q_ref[...] = (jnp.dot(mixed.astype(bf16), wh_ref[...],
                          preferred_element_type=f32) + bh_ref[...])


# ----------------------------------------------------------------------------
# One-time weight packing (hoisted out of the per-call forward)
# ----------------------------------------------------------------------------
def pack_params(params):
    f32, bf16 = jnp.float32, jnp.bfloat16
    E, din, H1 = params["w1"].shape
    H2 = params["w2"].shape[2]
    C, _, O = params["wh"].shape
    CO = C * O
    C_pad = _round_up(C, 8)
    out_lanes = _round_up(max(CO, 128), 128)

    w1_cat = params["w1"].transpose(1, 0, 2).reshape(din, E * H1).astype(bf16)
    b1_cat = params["b1"].reshape(1, E * H1).astype(f32)
    w2_bd = jax.scipy.linalg.block_diag(
        *[params["w2"][e] for e in range(E)]).astype(bf16)        # (E*H1, E*H2)
    b2_cat = params["b2"].reshape(1, E * H2).astype(f32)

    # Task-encoder weights, pre-broadcast over each expert's H2 lanes and
    # zero-padded to >=8 contraction rows: wenc_exp[c, e*H2 + k] = wenc[e, c].
    wenc_rep = jnp.repeat(params["wenc"].astype(f32).T, H2, axis=1)  # (C, E*H2)
    wenc_exp = (jnp.zeros((C_pad, E * H2), f32).at[:C].set(wenc_rep)
                .astype(bf16))

    # All context heads packed lane-dense, padded to >=128 output lanes and to
    # E*H2 contraction rows (rows >= H2 are zero -> they cancel mixture junk).
    wh_cat = params["wh"].transpose(1, 0, 2).reshape(H2, CO).astype(f32)
    wh_full = (jnp.zeros((E * H2, out_lanes), f32).at[:H2, :CO].set(wh_cat)
               .astype(bf16))
    bh_pad = jnp.zeros((1, out_lanes), f32).at[0, :CO].set(
        params["bh"].reshape(CO).astype(f32))

    return dict(wenc=wenc_exp, w1=w1_cat, b1=b1_cat, w2=w2_bd, b2=b2_cat,
                wh=wh_full, bh=bh_pad)


# ----------------------------------------------------------------------------
# Forward wrapper
# ----------------------------------------------------------------------------
@functools.partial(jax.jit,
                   static_argnames=("n_contexts", "n_experts", "n_output"))
def critic_forward(state, action, c, packed, *, n_contexts, n_experts,
                   n_output):
    f32, bf16 = jnp.float32, jnp.bfloat16
    C, E, O = n_contexts, n_experts, n_output
    CO = C * O

    din = packed["w1"].shape[0]
    EH1 = packed["w1"].shape[1]
    EH2 = packed["w2"].shape[1]
    H2 = EH2 // E
    C_pad = packed["wenc"].shape[0]
    out_lanes = packed["wh"].shape[1]

    c1h = jax.nn.one_hot(c, C_pad, dtype=bf16)      # one-hot is exact in bf16
    sa = jnp.concatenate([state.astype(f32), action.astype(f32)],
                         axis=1).astype(bf16)
    B = sa.shape[0]

    # --- batch tiling: big tiles to amortize ~0.35us per-step overhead; keep
    # >=2 grid steps once the batch is large enough so the "parallel" axis can
    # shard across both v7x TensorCores.  Per-step VMEM footprint stays a few
    # MB, well under every generation's scoped-VMEM default.
    if B <= 64:
        tile_b = _round_up(B, 16)
    else:
        tile_b = min(1024, _round_up((B + 1) // 2, 16))
    b_pad = _round_up(B, tile_b)
    if b_pad != B:
        sa_k = jnp.zeros((b_pad, din), bf16).at[:B].set(sa)
        c1h_k = jnp.zeros((b_pad, C_pad), bf16).at[:B].set(c1h)
    else:
        sa_k, c1h_k = sa, c1h
    grid = (b_pad // tile_b,)

    kernel = functools.partial(critic_kernel, n_experts=E, h2_dim=H2)

    flops = 2 * b_pad * (C_pad * EH2 + din * EH1 + EH1 * EH2 + EH2 * out_lanes)
    bytes_accessed = (2 * b_pad * (C_pad + din) + 4 * b_pad * out_lanes
                      + 2 * (C_pad * EH2 + din * EH1 + EH1 * EH2
                             + EH2 * out_lanes)
                      + 4 * (EH1 + EH2 + out_lanes))

    q_all = pl.pallas_call(
        kernel,
        out_shape=jax.ShapeDtypeStruct((b_pad, out_lanes), f32),
        grid=grid,
        in_specs=[
            pl.BlockSpec((tile_b, C_pad), lambda i: (i, 0)),    # one-hot ctx
            pl.BlockSpec((tile_b, din), lambda i: (i, 0)),      # state||action
            pl.BlockSpec((C_pad, EH2), lambda i: (0, 0)),       # wenc expanded
            pl.BlockSpec((din, EH1), lambda i: (0, 0)),         # w1 packed
            pl.BlockSpec((1, EH1), lambda i: (0, 0)),           # b1 packed
            pl.BlockSpec((EH1, EH2), lambda i: (0, 0)),         # w2 block-diag
            pl.BlockSpec((1, EH2), lambda i: (0, 0)),           # b2 packed
            pl.BlockSpec((EH2, out_lanes), lambda i: (0, 0)),   # heads (padded)
            pl.BlockSpec((1, out_lanes), lambda i: (0, 0)),     # head biases
        ],
        out_specs=pl.BlockSpec((tile_b, out_lanes), lambda i: (i, 0)),
        compiler_params=pltpu.CompilerParams(
            dimension_semantics=("parallel",)),
        cost_estimate=pl.CostEstimate(
            flops=flops, transcendentals=0, bytes_accessed=bytes_accessed),
    )(c1h_k, sa_k, packed["wenc"], packed["w1"], packed["b1"],
      packed["w2"], packed["b2"], packed["wh"], packed["bh"])

    # Per-row head selection (one-hot) on the sliced, tiny output, then squeeze
    # (matches torch.squeeze).
    q_sel = q_all[:B, :CO].reshape(B, C, O)
    q = jnp.einsum("bc,bco->bo", c1h[:, :C].astype(f32), q_sel)
    return jnp.squeeze(q)


# ----------------------------------------------------------------------------
# Pure-JAX reference.  mxu_dtype=bfloat16 emulates the kernel's matmul-operand
# precision (f32 accumulation) for a tight correctness check.
# ----------------------------------------------------------------------------
def critic_reference(state, action, c, params, *, n_contexts, n_experts,
                     mxu_dtype=jnp.float32):
    f32 = jnp.float32
    cast = lambda x: x.astype(mxu_dtype)
    c1h = jax.nn.one_hot(c, n_contexts, dtype=f32)
    sa = jnp.concatenate([state.astype(f32), action.astype(f32)], axis=1)
    w = jnp.einsum("bc,ec->be", cast(c1h), cast(params["wenc"]),
                   preferred_element_type=f32)                     # (B, E)
    h1 = jax.nn.relu(jnp.einsum("bd,edh->ebh", cast(sa), cast(params["w1"]),
                                preferred_element_type=f32)
                     + params["b1"][:, None, :])                   # (E, B, H1)
    h2 = jax.nn.relu(jnp.einsum("ebh,ehf->ebf", cast(h1), cast(params["w2"]),
                                preferred_element_type=f32)
                     + params["b2"][:, None, :])                   # (E, B, H2)
    feats = jax.nn.relu(jnp.transpose(h2, (1, 0, 2)))              # (B, E, H2)
    mixed = jax.nn.relu(jnp.einsum("be,bef->bf", w, feats))        # (B, H2)
    q_all = jnp.einsum("bf,cfo->bco", cast(mixed), cast(params["wh"]),
                       preferred_element_type=f32) + params["bh"][None]
    q = jnp.einsum("bc,bco->bo", c1h, q_all)
    return jnp.squeeze(q)


# ----------------------------------------------------------------------------
# Deterministic parameter init (xavier_uniform with PyTorch gains)
# ----------------------------------------------------------------------------
def xavier_uniform(key, shape, fan_in, fan_out, gain):
    a = gain * (6.0 / (fan_in + fan_out)) ** 0.5
    return jax.random.uniform(key, shape, jnp.float32, -a, a)


def init_params(key, din, n_features, n_contexts, n_experts, n_output):
    h1, h2 = n_features
    relu_gain = 2.0 ** 0.5
    ks = jax.random.split(key, 8)
    bound1 = 1.0 / (din ** 0.5)
    bound2 = 1.0 / (h1 ** 0.5)
    boundh = 1.0 / (h2 ** 0.5)
    return dict(
        wenc=xavier_uniform(ks[0], (n_experts, n_contexts),
                            n_contexts, n_experts, 1.0),
        w1=xavier_uniform(ks[1], (n_experts, din, h1), din, h1, relu_gain),
        b1=jax.random.uniform(ks[2], (n_experts, h1), jnp.float32,
                              -bound1, bound1),
        w2=xavier_uniform(ks[3], (n_experts, h1, h2), h1, h2, relu_gain),
        b2=jax.random.uniform(ks[4], (n_experts, h2), jnp.float32,
                              -bound2, bound2),
        wh=xavier_uniform(ks[5], (n_contexts, h2, n_output), h2, n_output, 1.0),
        bh=jax.random.uniform(ks[6], (n_contexts, n_output), jnp.float32,
                              -boundh, boundh),
    )


if __name__ == "__main__":
    # Small shapes consistent with the module's forward:
    B, STATE_DIM, ACTION_DIM = 8, 12, 4
    N_FEATURES = [32, 32]                        # backbone hidden sizes
    N_CONTEXTS, N_EXPERTS, N_OUTPUT = 3, 4, 1    # SAC critic -> scalar Q

    key = jax.random.PRNGKey(0)
    k_params, k_state, k_action, k_c = jax.random.split(key, 4)

    params = init_params(k_params, STATE_DIM + ACTION_DIM, N_FEATURES,
                         N_CONTEXTS, N_EXPERTS, N_OUTPUT)
    packed = pack_params(params)   # pack ONCE; reused across all forward calls

    state = jax.random.normal(k_state, (B, STATE_DIM), jnp.float32)
    action = jax.random.normal(k_action, (B, ACTION_DIM), jnp.float32)
    c = jax.random.randint(k_c, (B,), 0, N_CONTEXTS)

    q = critic_forward(state, action, c, packed, n_contexts=N_CONTEXTS,
                       n_experts=N_EXPERTS, n_output=N_OUTPUT)
    q = jax.block_until_ready(q)
    assert q.shape == (B,), q.shape

    q_ref_bf16 = critic_reference(state, action, c, params,
                                  n_contexts=N_CONTEXTS, n_experts=N_EXPERTS,
                                  mxu_dtype=jnp.bfloat16)
    q_ref_f32 = critic_reference(state, action, c, params,
                                 n_contexts=N_CONTEXTS, n_experts=N_EXPERTS,
                                 mxu_dtype=jnp.float32)
    assert jnp.allclose(q, q_ref_bf16, rtol=2e-3, atol=2e-3), (q, q_ref_bf16)
    assert jnp.allclose(q, q_ref_f32, rtol=5e-2, atol=5e-2), (q, q_ref_f32)

    # Larger batch: exercises batch padding + a multi-step "parallel" grid.
    B2 = 300
    k_s2, k_a2, k_c2 = jax.random.split(jax.random.PRNGKey(1), 3)
    state2 = jax.random.normal(k_s2, (B2, STATE_DIM), jnp.float32)
    action2 = jax.random.normal(k_a2, (B2, ACTION_DIM), jnp.float32)
    c2 = jax.random.randint(k_c2, (B2,), 0, N_CONTEXTS)
    q2 = jax.block_until_ready(
        critic_forward(state2, action2, c2, packed, n_contexts=N_CONTEXTS,
                       n_experts=N_EXPERTS, n_output=N_OUTPUT))
    q2_ref = critic_reference(state2, action2, c2, params,
                              n_contexts=N_CONTEXTS, n_experts=N_EXPERTS,
                              mxu_dtype=jnp.bfloat16)
    assert q2.shape == (B2,), q2.shape
    assert jnp.allclose(q2, q2_ref, rtol=2e-3, atol=2e-3), (q2, q2_ref)

    print("KERNEL_OK")
</pallas_src>

<mosaic_0001>
module attributes {stable_mosaic.version = 11 : i64} {
  func.func @critic_kernel(%arg0: i32, %arg1: memref<16x8xbf16, #tpu.memory_space<vmem>>, %arg2: memref<16x16xbf16, #tpu.memory_space<vmem>>, %arg3: memref<8x128xbf16, #tpu.memory_space<vmem>>, %arg4: memref<16x128xbf16, #tpu.memory_space<vmem>>, %arg5: memref<1x128xf32, #tpu.memory_space<vmem>>, %arg6: memref<128x128xbf16, #tpu.memory_space<vmem>>, %arg7: memref<1x128xf32, #tpu.memory_space<vmem>>, %arg8: memref<128x128xbf16, #tpu.memory_space<vmem>>, %arg9: memref<1x128xf32, #tpu.memory_space<vmem>>, %arg10: memref<16x128xf32, #tpu.memory_space<vmem>>) attributes {dimension_semantics = [#tpu.dimension_semantics<parallel>], iteration_bounds = array<i64: 1>, scalar_prefetch = 0 : i64, scratch_operands = 0 : i64, tpu.core_type = #tpu.core_type<tc>, window_params = [{transform_indices = @transform_0, window_bounds = array<i64: 16, 8>}, {transform_indices = @transform_1, window_bounds = array<i64: 16, 16>}, {pipeline_mode = #tpu.pipeline_mode<synchronous>, transform_indices = @transform_2, window_bounds = array<i64: 8, 128>}, {pipeline_mode = #tpu.pipeline_mode<synchronous>, transform_indices = @transform_3, window_bounds = array<i64: 16, 128>}, {pipeline_mode = #tpu.pipeline_mode<synchronous>, transform_indices = @transform_4, window_bounds = array<i64: 1, 128>}, {pipeline_mode = #tpu.pipeline_mode<synchronous>, transform_indices = @transform_5, window_bounds = array<i64: 128, 128>}, {pipeline_mode = #tpu.pipeline_mode<synchronous>, transform_indices = @transform_6, window_bounds = array<i64: 1, 128>}, {pipeline_mode = #tpu.pipeline_mode<synchronous>, transform_indices = @transform_7, window_bounds = array<i64: 128, 128>}, {pipeline_mode = #tpu.pipeline_mode<synchronous>, transform_indices = @transform_8, window_bounds = array<i64: 1, 128>}, {transform_indices = @transform_9, window_bounds = array<i64: 16, 128>}]} {
    %c0 = arith.constant 0 : index
    %c0_0 = arith.constant 0 : index
    %0 = vector.load %arg1[%c0, %c0_0] : memref<16x8xbf16, #tpu.memory_space<vmem>>, vector<16x8xbf16>
    %c0_1 = arith.constant 0 : index
    %c0_2 = arith.constant 0 : index
    %1 = vector.load %arg3[%c0_1, %c0_2] : memref<8x128xbf16, #tpu.memory_space<vmem>>, vector<8x128xbf16>
    %cst = arith.constant dense<0.000000e+00> : vector<16x128xf32>
    %2 = tpu.matmul %0, %1, %cst {dimension_numbers = #tpu.dot_dimension_numbers<[1], [0], [0], [1], [0, 0, 1, 1], [], []>} : vector<16x8xbf16>, vector<8x128xbf16>, vector<16x128xf32> -> vector<16x128xf32>
    %c0_3 = arith.constant 0 : index
    %c0_4 = arith.constant 0 : index
    %3 = vector.load %arg2[%c0_3, %c0_4] : memref<16x16xbf16, #tpu.memory_space<vmem>>, vector<16x16xbf16>
    %c0_5 = arith.constant 0 : index
    %c0_6 = arith.constant 0 : index
    %4 = vector.load %arg4[%c0_5, %c0_6] : memref<16x128xbf16, #tpu.memory_space<vmem>>, vector<16x128xbf16>
    %cst_7 = arith.constant dense<0.000000e+00> : vector<16x128xf32>
    %5 = tpu.matmul %3, %4, %cst_7 {dimension_numbers = #tpu.dot_dimension_numbers<[1], [0], [0], [1], [0, 0, 1, 1], [], []>} : vector<16x16xbf16>, vector<16x128xbf16>, vector<16x128xf32> -> vector<16x128xf32>
    %c0_8 = arith.constant 0 : index
    %c0_9 = arith.constant 0 : index
    %6 = vector.load %arg5[%c0_8, %c0_9] : memref<1x128xf32, #tpu.memory_space<vmem>>, vector<1x128xf32>
    %7 = vector.broadcast %6 : vector<1x128xf32> to vector<16x128xf32>
    %8 = arith.addf %5, %7 : vector<16x128xf32>
    %cst_10 = arith.constant 0.000000e+00 : f32
    %9 = vector.broadcast %cst_10 : f32 to vector<16x128xf32>
    %10 = arith.maximumf %8, %9 : vector<16x128xf32>
    %11 = arith.truncf %10 : vector<16x128xf32> to vector<16x128xbf16>
    %c0_11 = arith.constant 0 : index
    %c0_12 = arith.constant 0 : index
    %12 = vector.load %arg6[%c0_11, %c0_12] : memref<128x128xbf16, #tpu.memory_space<vmem>>, vector<128x128xbf16>
    %cst_13 = arith.constant dense<0.000000e+00> : vector<16x128xf32>
    %13 = tpu.matmul %11, %12, %cst_13 {dimension_numbers = #tpu.dot_dimension_numbers<[1], [0], [0], [1], [0, 0, 1, 1], [], []>} : vector<16x128xbf16>, vector<128x128xbf16>, vector<16x128xf32> -> vector<16x128xf32>
    %c0_14 = arith.constant 0 : index
    %c0_15 = arith.constant 0 : index
    %14 = vector.load %arg7[%c0_14, %c0_15] : memref<1x128xf32, #tpu.memory_space<vmem>>, vector<1x128xf32>
    %15 = vector.broadcast %14 : vector<1x128xf32> to vector<16x128xf32>
    %16 = arith.addf %13, %15 : vector<16x128xf32>
    %cst_16 = arith.constant 0.000000e+00 : f32
    %17 = vector.broadcast %cst_16 : f32 to vector<16x128xf32>
    %18 = arith.maximumf %16, %17 : vector<16x128xf32>
    %19 = arith.mulf %18, %2 : vector<16x128xf32>
    %c64_i32 = arith.constant 64 : i32
    %20 = tpu.dynamic_rotate %19 by %c64_i32 dim 1 : vector<16x128xf32>, i32 -> vector<16x128xf32>
    %21 = arith.addf %19, %20 : vector<16x128xf32>
    %c32_i32 = arith.constant 32 : i32
    %22 = tpu.dynamic_rotate %21 by %c32_i32 dim 1 : vector<16x128xf32>, i32 -> vector<16x128xf32>
    %23 = arith.addf %21, %22 : vector<16x128xf32>
    %cst_17 = arith.constant 0.000000e+00 : f32
    %24 = vector.broadcast %cst_17 : f32 to vector<16x128xf32>
    %25 = arith.maximumf %23, %24 : vector<16x128xf32>
    %26 = arith.truncf %25 : vector<16x128xf32> to vector<16x128xbf16>
    %c0_18 = arith.constant 0 : index
    %c0_19 = arith.constant 0 : index
    %27 = vector.load %arg8[%c0_18, %c0_19] : memref<128x128xbf16, #tpu.memory_space<vmem>>, vector<128x128xbf16>
    %cst_20 = arith.constant dense<0.000000e+00> : vector<16x128xf32>
    %28 = tpu.matmul %26, %27, %cst_20 {dimension_numbers = #tpu.dot_dimension_numbers<[1], [0], [0], [1], [0, 0, 1, 1], [], []>} : vector<16x128xbf16>, vector<128x128xbf16>, vector<16x128xf32> -> vector<16x128xf32>
    %c0_21 = arith.constant 0 : index
    %c0_22 = arith.constant 0 : index
    %29 = vector.load %arg9[%c0_21, %c0_22] : memref<1x128xf32, #tpu.memory_space<vmem>>, vector<1x128xf32>
    %30 = vector.broadcast %29 : vector<1x128xf32> to vector<16x128xf32>
    %31 = arith.addf %28, %30 : vector<16x128xf32>
    %c0_23 = arith.constant 0 : index
    %c0_24 = arith.constant 0 : index
    %32 = vector.load %arg10[%c0_23, %c0_24] : memref<16x128xf32, #tpu.memory_space<vmem>>, vector<16x128xf32>
    tpu.vector_store %arg10[%c0_23, %c0_24], %31 {strides = array<i32>} : memref<16x128xf32, #tpu.memory_space<vmem>>, vector<16x128xf32>,
    return
  }
  func.func @transform_0(%arg0: i32) -> (i32, i32) {
    %c0_i32 = arith.constant 0 : i32
    %c0_i32_0 = arith.constant 0 : i32
    return %arg0, %c0_i32 : i32, i32
  }
  func.func @transform_1(%arg0: i32) -> (i32, i32) {
    %c0_i32 = arith.constant 0 : i32
    %c0_i32_0 = arith.constant 0 : i32
    return %arg0, %c0_i32 : i32, i32
  }
  func.func @transform_2(%arg0: i32) -> (i32, i32) {
    %c0_i32 = arith.constant 0 : i32
    %c0_i32_0 = arith.constant 0 : i32
    %c0_i32_1 = arith.constant 0 : i32
    return %c0_i32, %c0_i32_0 : i32, i32
  }
  func.func @transform_3(%arg0: i32) -> (i32, i32) {
    %c0_i32 = arith.constant 0 : i32
    %c0_i32_0 = arith.constant 0 : i32
    %c0_i32_1 = arith.constant 0 : i32
    return %c0_i32, %c0_i32_0 : i32, i32
  }
  func.func @transform_4(%arg0: i32) -> (i32, i32) {
    %c0_i32 = arith.constant 0 : i32
    %c0_i32_0 = arith.constant 0 : i32
    %c0_i32_1 = arith.constant 0 : i32
    return %c0_i32, %c0_i32_0 : i32, i32
  }
  func.func @transform_5(%arg0: i32) -> (i32, i32) {
    %c0_i32 = arith.constant 0 : i32
    %c0_i32_0 = arith.constant 0 : i32
    %c0_i32_1 = arith.constant 0 : i32
    return %c0_i32, %c0_i32_0 : i32, i32
  }
  func.func @transform_6(%arg0: i32) -> (i32, i32) {
    %c0_i32 = arith.constant 0 : i32
    %c0_i32_0 = arith.constant 0 : i32
    %c0_i32_1 = arith.constant 0 : i32
    return %c0_i32, %c0_i32_0 : i32, i32
  }
  func.func @transform_7(%arg0: i32) -> (i32, i32) {
    %c0_i32 = arith.constant 0 : i32
    %c0_i32_0 = arith.constant 0 : i32
    %c0_i32_1 = arith.constant 0 : i32
    return %c0_i32, %c0_i32_0 : i32, i32
  }
  func.func @transform_8(%arg0: i32) -> (i32, i32) {
    %c0_i32 = arith.constant 0 : i32
    %c0_i32_0 = arith.constant 0 : i32
    %c0_i32_1 = arith.constant 0 : i32
    return %c0_i32, %c0_i32_0 : i32, i32
  }
  func.func @transform_9(%arg0: i32) -> (i32, i32) {
    %c0_i32 = arith.constant 0 : i32
    %c0_i32_0 = arith.constant 0 : i32
    return %arg0, %c0_i32 : i32, i32
  }
}

</mosaic_0001>

<bundles_post_ra>
// kernel: critic_forward.1
= control target key start
LH: loop header
LB: loop body
LE: loop exit
PB: predicated region body
PF: predicated region fallthrough
CT: control target
= control target key end

     0   :  { %14 = vsyncpa [#allocation3], 0  ;;  %s571_s30 = smov [#allocation2]   ;;  %s720_s0 = inlined_call_operand.vmem [shape: bf16[16,8], index: 0, kind: input, shape index: {}]   ;;  %s721_s1 = inlined_call_operand.vmem [shape: bf16[16,16], index: 1, kind: input, shape index: {}]   ;;  %s722_s2 = inlined_call_operand.vmem [shape: bf16[8,128], index: 2, kind: input, shape index: {}]   ;;  %s723_s3 = inlined_call_operand.vmem [shape: bf16[16,128], index: 3, kind: input, shape index: {}]   ;;  %s724_s4 = inlined_call_operand.vmem [shape: f32[1,128], index: 4, kind: input, shape index: {}]   ;;  %s725_s5 = inlined_call_operand.vmem [shape: bf16[128,128], index: 5, kind: input, shape index: {}]   ;;  %s726_s6 = inlined_call_operand.vmem [shape: f32[1,128], index: 6, kind: input, shape index: {}]   ;;  %s727_s7 = inlined_call_operand.hbm [shape: bf16[128,128], index: 7, kind: input, shape index: {}]   ;;  %s728_s8 = inlined_call_operand.vmem [shape: f32[1,128], index: 8, kind: input, shape index: {}]   ;;  %s729_s9 = inlined_call_operand.vmem [shape: f32[16,128], index: 9, kind: output, shape index: {}]  }
   0x1   :  { %s34_s10 = sshll.u32 %s571_s30, 4  ;;  %s547_s13 = scalar_lea.hbm %s727_s7, 1024  ;;  %s35_s10 = int_to_ptr.vmem [resolvable:$true] %s34_s10 }
   0x2   :  { %p548_p0 = scmp.ne.s32.totalorder %s727_s7, %s547_s13  ;;  %p551_p1 = scmp.lt.u32.totalorder %s547_s13, %s727_s7 }
   0x4   :  { %p553_p2 = pnand %p551_p1, %p548_p0 }
   0x6   :  { %556 = shalt.err (!%p553_p2)
}
   0x7   :  { %s557_s18 = scalar_lea.vmem %s35_s10, 1024  ;;  %p562_p4 = scmp.lt.s32.totalorder %s35_s10, %s35_s10 }
   0x8   :  { %p558_p3 = scmp.ne.s32.totalorder %s35_s10, %s557_s18  ;;  %p563_p5 = scmp.lt.s32.totalorder %s557_s18, %s557_s18 }
   0xa   :  { %p564_p6 = por %p563_p5, %p562_p4 }
   0xc   :  { %p565_p7 = pnand %p564_p6, %p558_p3 }
   0xe   :  { %568 = shalt.err (!%p565_p7)
}
   0xf   :  { %s572_s19 = smov 64   ;;  %s573_s20 = smov 4  }
  0x10   :  { %40 = dma.hbm_to_vmem [thread:$0]  %s727_s7, 1024, %s35_s10, [#allocation3], %s572_s19, %s572_s19, %s573_s20  }
  0x11   :  { %569 = dma.done.wait [#allocation3], 1024  }
  0x12   :  { %570 = vsyncadd [#allocation3], 4294966272  ;;  %v574_v0 = vmov 0.0   ;;  %vm575_vm0 = vmmov 0   ;;  %v528_v1 = vld [vmem:[%s723_s3] sm:$0xff]   ;;  %vm59_vm1 = vcmask 1043456  }
  0x13   :  { %476 = vmatprep.subr.bf16.mxu1 %v574_v0  ;;  %478 = vmatprep.mubr.msk.bf16.mxu1 %vm575_vm0, %v574_v0  ;;  %v529_v2 = vld [vmem:[%s721_s1] sm:$0xff]   ;;  %vm126_vm2 = vcmask 130048   ;;  %vm55_vm3 = vcmask 64512   ;;  %v532_v7 = vld [vmem:[%s725_s5 + $0x8] sm:$0xff]   ;;  %v533_v8 = vld [vmem:[%s725_s5 + $0x10] sm:$0xff]  }
  0x14   :  { %470 = vmatprep.subr.bf16.mxu0 %v574_v0  ;;  %472 = vmatprep.mubr.msk.bf16.mxu0 %vm575_vm0, %v574_v0  ;;  %v49_v3 = vld [vmem:[%s722_s2] sm:$0xf]  ;;  %v534_v9 = vld [vmem:[%s725_s5 + $0x18] sm:$0xff]   ;;  %v536_v11 = vld [vmem:[%s725_s5 + $0x28] sm:$0xff]  }
  0x15   :  { %477 = vmatpush3.bf16.msra.mxu1 %v528_v1  ;;  %v61_v4 = vsel %vm59_vm1, %v49_v3, 0  ;;  %v530_v5 = vld [vmem:[%s720_s0] sm:$0xff]   ;;  %v537_v12 = vld [vmem:[%s725_s5 + $0x30] sm:$0xff]   ;;  %v538_v13 = vld [vmem:[%s725_s5 + $0x38] sm:$0xff]  }
  0x16   :  { %502 = vmatprep.subr.bf16.mxu1 %v574_v0  ;;  %471 = vmatpush3.bf16.msra.mxu0 %v61_v4  ;;  %v531_v6 = vld [vmem:[%s725_s5] sm:$0xff]   ;;  %v540_v34 = vld [vmem:[#allocation2 + $0x8] sm:$0xff]   ;;  %v541_v40 = vld [vmem:[#allocation2 + $0x10] sm:$0xff]  }
  0x17   :  { %482 = vmatprep.subr.bf16.mxu0 %v574_v0  ;;  %v535_v10 = vld [vmem:[%s725_s5 + $0x20] sm:$0xff]   ;;  %v542_v42 = vld [vmem:[#allocation2 + $0x18] sm:$0xff]   ;;  %v544_v44 = vld [vmem:[#allocation2 + $0x28] sm:$0xff]  }
  0x18   :  { %479 = vmatmul.mubr.msk.bf16.vlgmr.msra.gmra.mrb[0].mxu1 %vm126_vm2, %v529_v2  ;;  %v426_v14 = vld [vmem:[%s724_s4] ss:$0 sm:$0xff]  ;;  %v545_v45 = vld [vmem:[#allocation2 + $0x30] sm:$0xff]   ;;  %v546_v46 = vld [vmem:[#allocation2 + $0x38] sm:$0xff]   ;;  %s576_s4 = smov 32  }
  0x19   :  { %518 = vmatprep.mubr.msk.bf16.mxu1 %vm575_vm0, %v574_v0  ;;  %473 = vmatmul.mubr.msk.bf16.vlgmr.msra.gmra.mrb[0].mxu0 %vm55_vm3, %v530_v5  ;;  %v430_v28 = vld [vmem:[%s726_s6] ss:$0 sm:$0xff] }
  0x1a   :  { %483 = vmatpush3.bf16.msra.mxu0 %v531_v6  ;;  %498 = vmatprep.mubr.msk.bf16.mxu0 %vm575_vm0, %v574_v0  ;;  %v539_v30 = vld [vmem:[#allocation2] sm:$0xff]  }
  0x1b   :  { %484 = vmatprep.subr.bf16.mxu0 %v574_v0  ;;  %503 = vmatpush3.bf16.msra.mxu1 %v539_v30  ;;  %v543_v43 = vld [vmem:[#allocation2 + $0x20] sm:$0xff]  }
  0x1c   :  { %504 = vmatprep.subr.bf16.mxu1 %v574_v0  ;;  %v439_v58 = vld [vmem:[%s728_s8] ss:$0 sm:$0xff] }
  0x1e   :  { %485 = vmatpush3.bf16.msra.mxu0 %v532_v7 }
  0x1f   :  { %486 = vmatprep.subr.bf16.mxu0 %v574_v0  ;;  %505 = vmatpush3.bf16.msra.mxu1 %v540_v34 }
  0x20   :  { %506 = vmatprep.subr.bf16.mxu1 %v574_v0 }
  0x22   :  { %487 = vmatpush3.bf16.msra.mxu0 %v533_v8 }
  0x23   :  { %488 = vmatprep.subr.bf16.mxu0 %v574_v0  ;;  %507 = vmatpush3.bf16.msra.mxu1 %v541_v40 }
  0x24   :  { %508 = vmatprep.subr.bf16.mxu1 %v574_v0 }
  0x26   :  { %489 = vmatpush3.bf16.msra.mxu0 %v534_v9 }
  0x27   :  { %490 = vmatprep.subr.bf16.mxu0 %v574_v0  ;;  %509 = vmatpush3.bf16.msra.mxu1 %v542_v42 }
  0x28   :  { %510 = vmatprep.subr.bf16.mxu1 %v574_v0 }
  0x2a   :  { %491 = vmatpush3.bf16.msra.mxu0 %v535_v10 }
  0x2b   :  { %492 = vmatprep.subr.bf16.mxu0 %v574_v0  ;;  %511 = vmatpush3.bf16.msra.mxu1 %v543_v43 }
  0x2c   :  { %512 = vmatprep.subr.bf16.mxu1 %v574_v0 }
  0x2e   :  { %493 = vmatpush3.bf16.msra.mxu0 %v536_v11 }
  0x2f   :  { %494 = vmatprep.subr.bf16.mxu0 %v574_v0  ;;  %513 = vmatpush3.bf16.msra.mxu1 %v544_v44 }
  0x30   :  { %514 = vmatprep.subr.bf16.mxu1 %v574_v0 }
  0x32   :  { %495 = vmatpush3.bf16.msra.mxu0 %v537_v12 }
  0x33   :  { %496 = vmatprep.subr.bf16.mxu0 %v574_v0  ;;  %515 = vmatpush3.bf16.msra.mxu1 %v545_v45 }
  0x34   :  { %516 = vmatprep.subr.bf16.mxu1 %v574_v0 }
  0x36   :  { %497 = vmatpush3.bf16.msra.mxu0 %v538_v13 }
  0x37   :  { %517 = vmatpush3.bf16.msra.mxu1 %v546_v46 }
  0xeb   :  { %v164_v15 = vpop.f32.mrb[0].mxu1 }
  0xec   :  { %v165_v16 = vadd.f32 %v426_v14, %v164_v15  ;;  %v480_v17 = vpop.f32.mrb[1].mxu1  ;;  %v97_v19 = vpop.f32.mrb[0].mxu0 }
  0xed   :  { %v167_v18 = vpop.f32.mrb[2].mxu1  ;;  %v474_v22 = vpop.f32.mrb[1].mxu0 }
  0xee   :  { %v168_v20 = vadd.f32 %v426_v14, %v167_v18  ;;  %v481_v21 = vpop.f32.mrb[3].mxu1  ;;  %v100_v23 = vpop.f32.mrb[2].mxu0  ;;  %v171_v24 = vmax.f32 %v165_v16, 0.0 }
  0xef   :  { %v475_v26 = vpop.f32.mrb[3].mxu0 }
  0xf0   :  { %v172_v25 = vmax.f32 %v168_v20, 0.0 }
  0xf2   :  { %v173_v27 = vpack.c.bf16 %v172_v25, %v171_v24 }
  0xf4   :  { %499 = vmatmul.mubr.bf16.vlgmr.msra.gmra.mrb[4].mxu0 %v173_v27 }
 0x1c7   :  { %v279_v29 = vpop.f32.mrb[4].mxu0 }
 0x1c8   :  { %v280_v31 = vadd.f32 %v430_v28, %v279_v29  ;;  %v500_v32 = vpop.f32.mrb[5].mxu0 }
 0x1c9   :  { %v282_v33 = vpop.f32.mrb[6].mxu0 }
 0x1ca   :  { %v286_v35 = vmax.f32 %v280_v31, 0.0  ;;  %v283_v36 = vadd.f32 %v430_v28, %v282_v33  ;;  %v501_v37 = vpop.f32.mrb[7].mxu0 }
 0x1cc   :  { %v287_v38 = vmax.f32 %v283_v36, 0.0  ;;  %v288_v39 = vmul.f32 %v286_v35, %v97_v19 }
 0x1ce   :  { %290 = vrot.lane.b32.xlu0 %v288_v39, %s572_s19  ;;  %v289_v41 = vmul.f32 %v287_v38, %v100_v23 }
 0x1d2   :  { %292 = vrot.lane.b32.xlu0 %v289_v41, %s572_s19 }
 0x240   :  { %v291_v47 = vpop.permute.xlu0 %290 }
 0x241   :  { %v294_v48 = vadd.f32 %v291_v47, %v288_v39 }
 0x243   :  { %296 = vrot.lane.b32.xlu1 %v294_v48, %s576_s4 }
 0x244   :  { %v293_v49 = vpop.permute.xlu0 %292 }
 0x245   :  { %v295_v50 = vadd.f32 %v293_v49, %v289_v41 }
 0x247   :  { %298 = vrot.lane.b32.xlu1 %v295_v50, %s576_s4 }
 0x2b5   :  { %v297_v51 = vpop.permute.xlu1 %296 }
 0x2b6   :  { %v300_v52 = vadd.f32 %v297_v51, %v294_v48 }
 0x2b8   :  { %v302_v55 = vmax.f32 %v300_v52, 0.0 }
 0x2b9   :  { %v299_v53 = vpop.permute.xlu1 %298 }
 0x2ba   :  { %v301_v54 = vadd.f32 %v299_v53, %v295_v50 }
 0x2bc   :  { %v303_v56 = vmax.f32 %v301_v54, 0.0 }
 0x2be   :  { %v304_v57 = vpack.c.bf16 %v303_v56, %v302_v55 }
 0x2c0   :  { %519 = vmatmul.mubr.bf16.vlgmr.msra.gmra.mrb[4].mxu1 %v304_v57 }
 0x393   :  { %v410_v59 = vpop.f32.mrb[4].mxu1 }
 0x394   :  { %v411_v60 = vadd.f32 %v439_v58, %v410_v59  ;;  %v520_v61 = vpop.f32.mrb[5].mxu1 }
 0x395   :  { %v413_v62 = vpop.f32.mrb[6].mxu1 }
 0x396   :  { %417 = vst [vmem:[%s729_s9] sm:$0xff] %v411_v60  ;;  %v414_v63 = vadd.f32 %v439_v58, %v413_v62  ;;  %v521_v0 = vpop.f32.mrb[7].mxu1 }
 0x398   :  { %418 = vst [vmem:[%s729_s9 + $0x8] sm:$0xff] %v414_v63 }
 0x399   :  { %423 = vsyncpa [#allocation3], 1 }

</bundles_post_ra>
